<compile_context>
chip_gen: v7x
topology: tpu7x:2x2x1
jax: 0.10.0
libtpu: 0.0.40
codegen_flags: <defaults>
</compile_context>

<pallas_src>
import functools

import jax
import jax.numpy as jnp
from jax import lax
from jax.experimental import pallas as pl
from jax.experimental.pallas import tpu as pltpu

IN_FEATURES = 12
HIDDEN = (32, 64, 128, 256)
NUM_HEADS = 5
HEAD_OUT = 2
OUT_FUSED = NUM_HEADS * HEAD_OUT   # 10

SUB_B = 512                        # rows per inner compute sub-block
TILE_B_CAP = 4096                  # batch-tile cap (v7x 64 MiB VMEM friendly)


def _round_up(x, m):
    return ((x + m - 1) // m) * m


def _mlp_kernel(x_ref,
                w1_ref, b1_ref,
                w2_ref, b2_ref,
                w3_ref, b3_ref,
                w4_ref, b4_ref,
                wo_ref, bo_ref,
                out_ref, *, sub_b, n_sub):
    """Runs all 5 layers over `n_sub` batch sub-blocks of `sub_b` rows each."""

    def body(k, carry):
        r0 = pl.multiple_of(k * sub_b, sub_b)
        xs = x_ref[pl.ds(r0, sub_b), :]                              # (sub_b, 12) f32

        # fc1 in f32 (tiny K=12 -> essentially free; closer parity with the f32 module).
        h = jnp.dot(xs, w1_ref[...], preferred_element_type=jnp.float32) + b1_ref[...]
        h = jnp.maximum(h.astype(jnp.bfloat16), 0)                   # bias f32 -> cast -> ReLU bf16

        h = jnp.dot(h, w2_ref[...], preferred_element_type=jnp.float32) + b2_ref[...]
        h = jnp.maximum(h.astype(jnp.bfloat16), 0)

        h = jnp.dot(h, w3_ref[...], preferred_element_type=jnp.float32) + b3_ref[...]
        h = jnp.maximum(h.astype(jnp.bfloat16), 0)

        h = jnp.dot(h, w4_ref[...], preferred_element_type=jnp.float32) + b4_ref[...]
        h = jnp.maximum(h.astype(jnp.bfloat16), 0)

        # Fused 5-head output: [sub_b, 256] @ [256, 10] + [1, 10].
        logits = jnp.dot(h, wo_ref[...], preferred_element_type=jnp.float32) + bo_ref[...]
        # sigmoid(z) = 1 / (1 + exp(-z)) with exp and the divide both on the EUP slot.
        sig = pl.reciprocal(1.0 + jnp.exp(-logits), approx=True)
        out_ref[pl.ds(r0, sub_b), :] = sig.astype(out_ref.dtype)
        return carry

    lax.fori_loop(0, n_sub, body, 0, unroll=(n_sub <= 8))


@functools.partial(jax.jit, static_argnames=("tile_b_max",))
def multi_head_multi_category(x, params, tile_b_max=TILE_B_CAP):
    """x: [B, 12] float32. params: dict from init_params(). Returns 5 x [B, 2] float32."""
    B = x.shape[0]

    # Batch tile: ~B/2 (so the grid has >= 2 steps for megacore when batch allows),
    # multiple of 8 sublanes, capped for v7x VMEM; rounded to a multiple of the inner
    # sub-block when large enough.
    tile_b = min(tile_b_max, max(_round_up(pl.cdiv(B, 2), 8), 8))
    if tile_b >= SUB_B:
        tile_b = _round_up(tile_b, SUB_B)
        sub_b = SUB_B
    else:
        sub_b = tile_b
    n_sub = tile_b // sub_b
    grid = (pl.cdiv(B, tile_b),)        # partial last block is masked by Pallas (no x copy)

    const2d = lambda i: (0, 0)          # weights/biases: same block every step -> VMEM-resident

    in_specs = [
        pl.BlockSpec((tile_b, IN_FEATURES), lambda i: (i, 0)),          # x tile (K=12, full dim)
        pl.BlockSpec((IN_FEATURES, HIDDEN[0]), const2d),                # w1 (f32)
        pl.BlockSpec((1, HIDDEN[0]), const2d),                          # b1
        pl.BlockSpec((HIDDEN[0], HIDDEN[1]), const2d),                  # w2
        pl.BlockSpec((1, HIDDEN[1]), const2d),                          # b2
        pl.BlockSpec((HIDDEN[1], HIDDEN[2]), const2d),                  # w3
        pl.BlockSpec((1, HIDDEN[2]), const2d),                          # b3
        pl.BlockSpec((HIDDEN[2], HIDDEN[3]), const2d),                  # w4
        pl.BlockSpec((1, HIDDEN[3]), const2d),                          # b4
        pl.BlockSpec((HIDDEN[3], OUT_FUSED), const2d),                  # w_out (fused heads)
        pl.BlockSpec((1, OUT_FUSED), const2d),                          # b_out
    ]
    out_specs = pl.BlockSpec((tile_b, OUT_FUSED), lambda i: (i, 0))

    # VMEM budget from the actual (lane-padded, double-buffered) footprint; only ever raised
    # above the 32 MiB scoped default, capped at 48 MiB (safe inside v7x's 64 MiB).
    est = (2 * tile_b * 128 * 4          # x blocks (f32, lane-padded), double-buffered
           + 2 * tile_b * 128 * 2        # out blocks (bf16, lane-padded), double-buffered
           + 2 * 512 * 1024              # resident weights/biases (+ second buffers)
           + 6 * sub_b * 256 * 4)        # in-flight activations / epilogue temporaries
    vmem_limit = min(48 << 20, max(32 << 20, 2 * est))

    # Advisory cost hint for the XLA scheduler.
    mac_per_row = (IN_FEATURES * HIDDEN[0] + HIDDEN[0] * HIDDEN[1]
                   + HIDDEN[1] * HIDDEN[2] + HIDDEN[2] * HIDDEN[3]
                   + HIDDEN[3] * OUT_FUSED)
    weight_bytes = 2 * mac_per_row + 4 * (sum(HIDDEN) + OUT_FUSED)
    cost = pl.CostEstimate(
        flops=2 * B * mac_per_row,
        transcendentals=B * OUT_FUSED,
        bytes_accessed=B * (IN_FEATURES * 4 + OUT_FUSED * 2) + weight_bytes,
    )

    out = pl.pallas_call(
        functools.partial(_mlp_kernel, sub_b=sub_b, n_sub=n_sub),
        out_shape=jax.ShapeDtypeStruct((B, OUT_FUSED), jnp.bfloat16),
        grid=grid,
        in_specs=in_specs,
        out_specs=out_specs,
        compiler_params=pltpu.CompilerParams(
            dimension_semantics=("parallel",),
            vmem_limit_bytes=vmem_limit),
        cost_estimate=cost,
    )(
        x,
        params["w1"], params["b1"],
        params["w2"], params["b2"],
        params["w3"], params["b3"],
        params["w4"], params["b4"],
        params["w_out"], params["b_out"],
    )

    # Cast the tiny [B, 10] slab back to f32 (module contract) and split into 5 heads.
    probs = out.astype(jnp.float32).reshape(B, NUM_HEADS, HEAD_OUT)
    return tuple(probs[:, i, :] for i in range(NUM_HEADS))


def init_params(key):
    """Deterministic init matching the PyTorch module's layer shapes.
    nn.Linear(in, out) stores weight [out, in]; we store the transpose [in, out].
    w1 kept f32 (fc1 runs in f32); w2..w4 / w_out stored bf16 (MXU-native);
    biases f32 as (1, N) rows. The 5 heads are fused into [256, 10] / [1, 10]."""
    dims = [(IN_FEATURES, HIDDEN[0]), (HIDDEN[0], HIDDEN[1]),
            (HIDDEN[1], HIDDEN[2]), (HIDDEN[2], HIDDEN[3])]
    params = {}
    keys = jax.random.split(key, 2 * len(dims) + 2)
    ki = 0
    for idx, (fan_in, fan_out) in enumerate(dims, start=1):
        bound = 1.0 / jnp.sqrt(float(fan_in))
        w = jax.random.uniform(keys[ki], (fan_in, fan_out), jnp.float32, -bound, bound)
        ki += 1
        params[f"w{idx}"] = w if idx == 1 else w.astype(jnp.bfloat16)
        params[f"b{idx}"] = jax.random.uniform(
            keys[ki], (1, fan_out), jnp.float32, -bound, bound)
        ki += 1
    bound = 1.0 / jnp.sqrt(float(HIDDEN[3]))
    params["w_out"] = jax.random.uniform(
        keys[ki], (HIDDEN[3], OUT_FUSED), jnp.float32, -bound, bound).astype(jnp.bfloat16)
    ki += 1
    params["b_out"] = jax.random.uniform(
        keys[ki], (1, OUT_FUSED), jnp.float32, -bound, bound)
    return params


def _reference(x, p):
    """Pure-JAX f32 reference (bf16 weights cast back to f32)."""
    h = jnp.maximum(x @ p["w1"] + p["b1"], 0.0)
    for i in range(2, 5):
        h = jnp.maximum(h @ p[f"w{i}"].astype(jnp.float32) + p[f"b{i}"], 0.0)
    logits = h @ p["w_out"].astype(jnp.float32) + p["b_out"]
    out = jax.nn.sigmoid(logits)
    return tuple(out[:, HEAD_OUT * i:HEAD_OUT * (i + 1)] for i in range(NUM_HEADS))


if __name__ == "__main__":
    key = jax.random.PRNGKey(0)
    k_x, k_p = jax.random.split(key)

    B = 8  # small batch; input features = 12 as in nn.Linear(12, 32)
    x = jax.random.normal(k_x, (B, IN_FEATURES), jnp.float32)
    params = init_params(k_p)

    outs = multi_head_multi_category(x, params)
    outs = jax.block_until_ready(outs)

    refs = _reference(x, params)
    for o, r in zip(outs, refs):
        assert o.shape == (B, HEAD_OUT)
        assert o.dtype == jnp.float32
        # bf16 matmul operands / activations / output store (f32 accumulation) vs f32 reference.
        assert jnp.allclose(o, r, atol=2e-2, rtol=2e-2), (
            f"max abs diff {jnp.max(jnp.abs(o - r))}")

    print("KERNEL_OK")
</pallas_src>

<mosaic_0001>
module attributes {stable_mosaic.version = 11 : i64} {
  func.func @_mlp_kernel(%arg0: i32, %arg1: memref<8x12xf32, #tpu.memory_space<vmem>>, %arg2: memref<12x32xf32, #tpu.memory_space<vmem>>, %arg3: memref<1x32xf32, #tpu.memory_space<vmem>>, %arg4: memref<32x64xbf16, #tpu.memory_space<vmem>>, %arg5: memref<1x64xf32, #tpu.memory_space<vmem>>, %arg6: memref<64x128xbf16, #tpu.memory_space<vmem>>, %arg7: memref<1x128xf32, #tpu.memory_space<vmem>>, %arg8: memref<128x256xbf16, #tpu.memory_space<vmem>>, %arg9: memref<1x256xf32, #tpu.memory_space<vmem>>, %arg10: memref<256x10xbf16, #tpu.memory_space<vmem>>, %arg11: memref<1x10xf32, #tpu.memory_space<vmem>>, %arg12: memref<8x10xbf16, #tpu.memory_space<vmem>>) attributes {dimension_semantics = [#tpu.dimension_semantics<parallel>], iteration_bounds = array<i64: 1>, scalar_prefetch = 0 : i64, scratch_operands = 0 : i64, tpu.core_type = #tpu.core_type<tc>, window_params = [{transform_indices = @transform_0, window_bounds = array<i64: 8, 12>}, {pipeline_mode = #tpu.pipeline_mode<synchronous>, transform_indices = @transform_1, window_bounds = array<i64: 12, 32>}, {pipeline_mode = #tpu.pipeline_mode<synchronous>, transform_indices = @transform_2, window_bounds = array<i64: 1, 32>}, {pipeline_mode = #tpu.pipeline_mode<synchronous>, transform_indices = @transform_3, window_bounds = array<i64: 32, 64>}, {pipeline_mode = #tpu.pipeline_mode<synchronous>, transform_indices = @transform_4, window_bounds = array<i64: 1, 64>}, {pipeline_mode = #tpu.pipeline_mode<synchronous>, transform_indices = @transform_5, window_bounds = array<i64: 64, 128>}, {pipeline_mode = #tpu.pipeline_mode<synchronous>, transform_indices = @transform_6, window_bounds = array<i64: 1, 128>}, {pipeline_mode = #tpu.pipeline_mode<synchronous>, transform_indices = @transform_7, window_bounds = array<i64: 128, 256>}, {pipeline_mode = #tpu.pipeline_mode<synchronous>, transform_indices = @transform_8, window_bounds = array<i64: 1, 256>}, {pipeline_mode = #tpu.pipeline_mode<synchronous>, transform_indices = @transform_9, window_bounds = array<i64: 256, 10>}, {pipeline_mode = #tpu.pipeline_mode<synchronous>, transform_indices = @transform_10, window_bounds = array<i64: 1, 10>}, {transform_indices = @transform_11, window_bounds = array<i64: 8, 10>}]} {
    %c0_i32 = arith.constant 0 : i32
    %c8_i32 = arith.constant 8 : i32
    %0 = arith.muli %c0_i32, %c8_i32 : i32
    %1 = tpu.assume_multiple %0, 8 : i32
    %2 = arith.index_cast %1 : i32 to index
    %c0 = arith.constant 0 : index
    %3 = vector.load %arg1[%2, %c0] : memref<8x12xf32, #tpu.memory_space<vmem>>, vector<8x12xf32>
    %c0_0 = arith.constant 0 : index
    %c0_1 = arith.constant 0 : index
    %4 = vector.load %arg2[%c0_0, %c0_1] : memref<12x32xf32, #tpu.memory_space<vmem>>, vector<12x32xf32>
    %cst = arith.constant dense<0.000000e+00> : vector<8x32xf32>
    %5 = tpu.matmul %3, %4, %cst {dimension_numbers = #tpu.dot_dimension_numbers<[1], [0], [0], [1], [0, 0, 1, 1], [], []>} : vector<8x12xf32>, vector<12x32xf32>, vector<8x32xf32> -> vector<8x32xf32>
    %c0_2 = arith.constant 0 : index
    %c0_3 = arith.constant 0 : index
    %6 = vector.load %arg3[%c0_2, %c0_3] : memref<1x32xf32, #tpu.memory_space<vmem>>, vector<1x32xf32>
    %7 = vector.broadcast %6 : vector<1x32xf32> to vector<8x32xf32>
    %8 = arith.addf %5, %7 : vector<8x32xf32>
    %9 = arith.truncf %8 : vector<8x32xf32> to vector<8x32xbf16>
    %cst_4 = arith.constant 0.000000e+00 : bf16
    %10 = vector.broadcast %cst_4 : bf16 to vector<8x32xbf16>
    %11 = arith.maximumf %9, %10 : vector<8x32xbf16>
    %c0_5 = arith.constant 0 : index
    %c0_6 = arith.constant 0 : index
    %12 = vector.load %arg4[%c0_5, %c0_6] : memref<32x64xbf16, #tpu.memory_space<vmem>>, vector<32x64xbf16>
    %cst_7 = arith.constant dense<0.000000e+00> : vector<8x64xf32>
    %13 = tpu.matmul %11, %12, %cst_7 {dimension_numbers = #tpu.dot_dimension_numbers<[1], [0], [0], [1], [0, 0, 1, 1], [], []>} : vector<8x32xbf16>, vector<32x64xbf16>, vector<8x64xf32> -> vector<8x64xf32>
    %c0_8 = arith.constant 0 : index
    %c0_9 = arith.constant 0 : index
    %14 = vector.load %arg5[%c0_8, %c0_9] : memref<1x64xf32, #tpu.memory_space<vmem>>, vector<1x64xf32>
    %15 = vector.broadcast %14 : vector<1x64xf32> to vector<8x64xf32>
    %16 = arith.addf %13, %15 : vector<8x64xf32>
    %17 = arith.truncf %16 : vector<8x64xf32> to vector<8x64xbf16>
    %cst_10 = arith.constant 0.000000e+00 : bf16
    %18 = vector.broadcast %cst_10 : bf16 to vector<8x64xbf16>
    %19 = arith.maximumf %17, %18 : vector<8x64xbf16>
    %c0_11 = arith.constant 0 : index
    %c0_12 = arith.constant 0 : index
    %20 = vector.load %arg6[%c0_11, %c0_12] : memref<64x128xbf16, #tpu.memory_space<vmem>>, vector<64x128xbf16>
    %cst_13 = arith.constant dense<0.000000e+00> : vector<8x128xf32>
    %21 = tpu.matmul %19, %20, %cst_13 {dimension_numbers = #tpu.dot_dimension_numbers<[1], [0], [0], [1], [0, 0, 1, 1], [], []>} : vector<8x64xbf16>, vector<64x128xbf16>, vector<8x128xf32> -> vector<8x128xf32>
    %c0_14 = arith.constant 0 : index
    %c0_15 = arith.constant 0 : index
    %22 = vector.load %arg7[%c0_14, %c0_15] : memref<1x128xf32, #tpu.memory_space<vmem>>, vector<1x128xf32>
    %23 = vector.broadcast %22 : vector<1x128xf32> to vector<8x128xf32>
    %24 = arith.addf %21, %23 : vector<8x128xf32>
    %25 = arith.truncf %24 : vector<8x128xf32> to vector<8x128xbf16>
    %cst_16 = arith.constant 0.000000e+00 : bf16
    %26 = vector.broadcast %cst_16 : bf16 to vector<8x128xbf16>
    %27 = arith.maximumf %25, %26 : vector<8x128xbf16>
    %c0_17 = arith.constant 0 : index
    %c0_18 = arith.constant 0 : index
    %28 = vector.load %arg8[%c0_17, %c0_18] : memref<128x256xbf16, #tpu.memory_space<vmem>>, vector<128x256xbf16>
    %cst_19 = arith.constant dense<0.000000e+00> : vector<8x256xf32>
    %29 = tpu.matmul %27, %28, %cst_19 {dimension_numbers = #tpu.dot_dimension_numbers<[1], [0], [0], [1], [0, 0, 1, 1], [], []>} : vector<8x128xbf16>, vector<128x256xbf16>, vector<8x256xf32> -> vector<8x256xf32>
    %c0_20 = arith.constant 0 : index
    %c0_21 = arith.constant 0 : index
    %30 = vector.load %arg9[%c0_20, %c0_21] : memref<1x256xf32, #tpu.memory_space<vmem>>, vector<1x256xf32>
    %31 = vector.broadcast %30 : vector<1x256xf32> to vector<8x256xf32>
    %32 = arith.addf %29, %31 : vector<8x256xf32>
    %33 = arith.truncf %32 : vector<8x256xf32> to vector<8x256xbf16>
    %cst_22 = arith.constant 0.000000e+00 : bf16
    %34 = vector.broadcast %cst_22 : bf16 to vector<8x256xbf16>
    %35 = arith.maximumf %33, %34 : vector<8x256xbf16>
    %c0_23 = arith.constant 0 : index
    %c0_24 = arith.constant 0 : index
    %36 = vector.load %arg10[%c0_23, %c0_24] : memref<256x10xbf16, #tpu.memory_space<vmem>>, vector<256x10xbf16>
    %cst_25 = arith.constant dense<0.000000e+00> : vector<8x10xf32>
    %37 = tpu.matmul %35, %36, %cst_25 {dimension_numbers = #tpu.dot_dimension_numbers<[1], [0], [0], [1], [0, 0, 1, 1], [], []>} : vector<8x256xbf16>, vector<256x10xbf16>, vector<8x10xf32> -> vector<8x10xf32>
    %c0_26 = arith.constant 0 : index
    %c0_27 = arith.constant 0 : index
    %38 = vector.load %arg11[%c0_26, %c0_27] : memref<1x10xf32, #tpu.memory_space<vmem>>, vector<1x10xf32>
    %39 = vector.broadcast %38 : vector<1x10xf32> to vector<8x10xf32>
    %40 = arith.addf %37, %39 : vector<8x10xf32>
    %cst_28 = arith.constant 0.000000e+00 : f32
    %41 = vector.broadcast %cst_28 : f32 to vector<8x10xf32>
    %42 = arith.subf %41, %40 : vector<8x10xf32>
    %43 = math.exp %42 : vector<8x10xf32>
    %cst_29 = arith.constant 1.000000e+00 : f32
    %44 = vector.broadcast %cst_29 : f32 to vector<8x10xf32>
    %45 = arith.addf %44, %43 : vector<8x10xf32>
    %46 = tpu.reciprocal %45 {approx = true} : vector<8x10xf32> -> vector<8x10xf32>
    %47 = arith.truncf %46 : vector<8x10xf32> to vector<8x10xbf16>
    %48 = arith.index_cast %1 : i32 to index
    %c0_30 = arith.constant 0 : index
    %49 = vector.load %arg12[%48, %c0_30] : memref<8x10xbf16, #tpu.memory_space<vmem>>, vector<8x10xbf16>
    tpu.vector_store %arg12[%48, %c0_30], %47 {strides = array<i32>} : memref<8x10xbf16, #tpu.memory_space<vmem>>, vector<8x10xbf16>,
    %c1_i32 = arith.constant 1 : i32
    return
  }
  func.func @transform_0(%arg0: i32) -> (i32, i32) {
    %c0_i32 = arith.constant 0 : i32
    %c0_i32_0 = arith.constant 0 : i32
    return %arg0, %c0_i32 : i32, i32
  }
  func.func @transform_1(%arg0: i32) -> (i32, i32) {
    %c0_i32 = arith.constant 0 : i32
    %c0_i32_0 = arith.constant 0 : i32
    %c0_i32_1 = arith.constant 0 : i32
    return %c0_i32, %c0_i32_0 : i32, i32
  }
  func.func @transform_2(%arg0: i32) -> (i32, i32) {
    %c0_i32 = arith.constant 0 : i32
    %c0_i32_0 = arith.constant 0 : i32
    %c0_i32_1 = arith.constant 0 : i32
    return %c0_i32, %c0_i32_0 : i32, i32
  }
  func.func @transform_3(%arg0: i32) -> (i32, i32) {
    %c0_i32 = arith.constant 0 : i32
    %c0_i32_0 = arith.constant 0 : i32
    %c0_i32_1 = arith.constant 0 : i32
    return %c0_i32, %c0_i32_0 : i32, i32
  }
  func.func @transform_4(%arg0: i32) -> (i32, i32) {
    %c0_i32 = arith.constant 0 : i32
    %c0_i32_0 = arith.constant 0 : i32
    %c0_i32_1 = arith.constant 0 : i32
    return %c0_i32, %c0_i32_0 : i32, i32
  }
  func.func @transform_5(%arg0: i32) -> (i32, i32) {
    %c0_i32 = arith.constant 0 : i32
    %c0_i32_0 = arith.constant 0 : i32
    %c0_i32_1 = arith.constant 0 : i32
    return %c0_i32, %c0_i32_0 : i32, i32
  }
  func.func @transform_6(%arg0: i32) -> (i32, i32) {
    %c0_i32 = arith.constant 0 : i32
    %c0_i32_0 = arith.constant 0 : i32
    %c0_i32_1 = arith.constant 0 : i32
    return %c0_i32, %c0_i32_0 : i32, i32
  }
  func.func @transform_7(%arg0: i32) -> (i32, i32) {
    %c0_i32 = arith.constant 0 : i32
    %c0_i32_0 = arith.constant 0 : i32
    %c0_i32_1 = arith.constant 0 : i32
    return %c0_i32, %c0_i32_0 : i32, i32
  }
  func.func @transform_8(%arg0: i32) -> (i32, i32) {
    %c0_i32 = arith.constant 0 : i32
    %c0_i32_0 = arith.constant 0 : i32
    %c0_i32_1 = arith.constant 0 : i32
    return %c0_i32, %c0_i32_0 : i32, i32
  }
  func.func @transform_9(%arg0: i32) -> (i32, i32) {
    %c0_i32 = arith.constant 0 : i32
    %c0_i32_0 = arith.constant 0 : i32
    %c0_i32_1 = arith.constant 0 : i32
    return %c0_i32, %c0_i32_0 : i32, i32
  }
  func.func @transform_10(%arg0: i32) -> (i32, i32) {
    %c0_i32 = arith.constant 0 : i32
    %c0_i32_0 = arith.constant 0 : i32
    %c0_i32_1 = arith.constant 0 : i32
    return %c0_i32, %c0_i32_0 : i32, i32
  }
  func.func @transform_11(%arg0: i32) -> (i32, i32) {
    %c0_i32 = arith.constant 0 : i32
    %c0_i32_0 = arith.constant 0 : i32
    return %arg0, %c0_i32 : i32, i32
  }
}

</mosaic_0001>

<bundles_post_ra>
// kernel: multi_head_multi_category.1
= control target key start
LH: loop header
LB: loop body
LE: loop exit
PB: predicated region body
PF: predicated region fallthrough
CT: control target
= control target key end

     0   :  { %16 = vsyncpa [#allocation3], 0  ;;  %s1197_s0 = inlined_call_operand.hbm [shape: f32[8,12], index: 0, kind: input, shape index: {}]   ;;  %s1198_s1 = inlined_call_operand.hbm [shape: f32[12,32], index: 1, kind: input, shape index: {}]   ;;  %s1199_s2 = inlined_call_operand.vmem [shape: f32[1,32], index: 2, kind: input, shape index: {}]   ;;  %s1200_s3 = inlined_call_operand.hbm [shape: bf16[32,64], index: 3, kind: input, shape index: {}]   ;;  %s1201_s4 = inlined_call_operand.vmem [shape: f32[1,64], index: 4, kind: input, shape index: {}]   ;;  %s1202_s5 = inlined_call_operand.vmem [shape: bf16[64,128], index: 5, kind: input, shape index: {}]   ;;  %s1203_s6 = inlined_call_operand.vmem [shape: f32[1,128], index: 6, kind: input, shape index: {}]   ;;  %s1204_s7 = inlined_call_operand.vmem [shape: bf16[128,256], index: 7, kind: input, shape index: {}]   ;;  %s1205_s8 = inlined_call_operand.vmem [shape: f32[1,256], index: 8, kind: input, shape index: {}]   ;;  %s1206_s9 = inlined_call_operand.vmem [shape: bf16[256,10], index: 9, kind: input, shape index: {}]   ;;  %s1207_s10 = inlined_call_operand.hbm [shape: f32[1,10], index: 10, kind: input, shape index: {}]   ;;  %s1208_s11 = inlined_call_operand.vmem [shape: bf16[8,10], index: 11, kind: output, shape index: {}]  }
   0x1   :  { %17 = vsyncpa [#allocation5], 0 }
   0x2   :  { %18 = vsyncpa [#allocation8], 0  ;;  %s944_s17 = smov [#allocation4]   ;;  %s850_s21 = scalar_lea.hbm %s1198_s1, 256 }
   0x3   :  { %s34_s18 = sshll.u32 %s944_s17, 4  ;;  %p851_p0 = scmp.ne.s32.totalorder %s1198_s1, %s850_s21  ;;  %s35_s18 = int_to_ptr.vmem [resolvable:$true] %s34_s18 }
   0x4   :  { %p854_p1 = scmp.lt.u32.totalorder %s850_s21, %s1198_s1 }
   0x6   :  { %p856_p2 = pnand %p854_p1, %p851_p0 }
   0x8   :  { %859 = shalt.err (!%p856_p2)
}
   0x9   :  { %s860_s26 = scalar_lea.vmem %s35_s18, 256  ;;  %p865_p4 = scmp.lt.s32.totalorder %s35_s18, %s35_s18 }
   0xa   :  { %p861_p3 = scmp.ne.s32.totalorder %s35_s18, %s860_s26  ;;  %p866_p5 = scmp.lt.s32.totalorder %s860_s26, %s860_s26 }
   0xc   :  { %p867_p6 = por %p866_p5, %p865_p4 }
   0xe   :  { %p868_p7 = pnand %p867_p6, %p861_p3 }
  0x10   :  { %871 = shalt.err (!%p868_p7)
}
  0x11   :  { %s945_s27 = smov 128   ;;  %s946_s28 = smov 8  }
  0x12   :  { %40 = dma.hbm_to_vmem [thread:$0]  %s1198_s1, 256, %s35_s18, [#allocation5], %s945_s27, %s945_s27, %s946_s28  }
  0x13   :  { %s947_s12 = smov [#allocation2]   ;;  %s948_s14 = smov [#allocation6]  }
  0x14   :  { %s25_s13 = sshll.u32 %s947_s12, 4  ;;  %s48_s15 = sshll.u32 %s948_s14, 4  ;;  %s26_s13 = int_to_ptr.vmem [resolvable:$true] %s25_s13  ;;  %s49_s15 = int_to_ptr.vmem [resolvable:$true] %s48_s15 }
  0x15   :  { %s872_s19 = scalar_lea.hbm %s1197_s0, 128 }
  0x16   :  { %p873_p8 = scmp.ne.s32.totalorder %s1197_s0, %s872_s19  ;;  %p876_p9 = scmp.lt.u32.totalorder %s872_s19, %s1197_s0 }
  0x18   :  { %p878_p10 = pnand %p876_p9, %p873_p8 }
  0x1a   :  { %881 = shalt.err (!%p878_p10)
}
  0x1b   :  { %s882_s1 = scalar_lea.vmem %s26_s13, 128  ;;  %p887_p12 = scmp.lt.s32.totalorder %s26_s13, %s26_s13 }
  0x1c   :  { %p883_p11 = scmp.ne.s32.totalorder %s26_s13, %s882_s1  ;;  %p888_p13 = scmp.lt.s32.totalorder %s882_s1, %s882_s1 }
  0x1e   :  { %p889_p0 = por %p888_p13, %p887_p12 }
  0x20   :  { %p890_p1 = pnand %p889_p0, %p883_p11 }
  0x22   :  { %893 = shalt.err (!%p890_p1)
}
  0x23   :  { %28 = dma.hbm_to_vmem [thread:$0]  %s1197_s0, 128, %s26_s13, [#allocation3]  }
  0x24   :  { %s894_s27 = scalar_lea.hbm %s1200_s3, 256 }
  0x25   :  { %p895_p2 = scmp.ne.s32.totalorder %s1200_s3, %s894_s27  ;;  %p898_p3 = scmp.lt.u32.totalorder %s894_s27, %s1200_s3 }
  0x27   :  { %p900_p4 = pnand %p898_p3, %p895_p2 }
  0x29   :  { %903 = shalt.err (!%p900_p4)
}
  0x2a   :  { %s904_s14 = scalar_lea.vmem %s49_s15, 256  ;;  %p909_p6 = scmp.lt.s32.totalorder %s49_s15, %s49_s15 }
  0x2b   :  { %p905_p5 = scmp.ne.s32.totalorder %s49_s15, %s904_s14  ;;  %p910_p7 = scmp.lt.s32.totalorder %s904_s14, %s904_s14 }
  0x2d   :  { %p911_p8 = por %p910_p7, %p909_p6 }
  0x2f   :  { %p912_p9 = pnand %p911_p8, %p905_p5 }
  0x31   :  { %915 = shalt.err (!%p912_p9)
}
  0x32   :  { %s949_s0 = smov 64   ;;  %s950_s13 = smov 4  }
  0x33   :  { %54 = dma.hbm_to_vmem [thread:$0]  %s1200_s3, 256, %s49_s15, [#allocation5], %s949_s0, %s949_s0, %s950_s13  }
  0x34   :  { %s951_s19 = smov [#allocation7]   ;;  %s916_s23 = scalar_lea.hbm %s1207_s10, 16 }
  0x35   :  { %s73_s20 = sshll.u32 %s951_s19, 4  ;;  %p917_p10 = scmp.ne.s32.totalorder %s1207_s10, %s916_s23  ;;  %s74_s20 = int_to_ptr.vmem [resolvable:$true] %s73_s20 }
  0x36   :  { %p920_p11 = scmp.lt.u32.totalorder %s916_s23, %s1207_s10 }
  0x38   :  { %p922_p12 = pnand %p920_p11, %p917_p10 }
  0x3a   :  { %925 = shalt.err (!%p922_p12)
}
  0x3b   :  { %s926_s26 = scalar_lea.vmem %s74_s20, 16  ;;  %s930_s3 = scalar_lea.vmem %s74_s20, 32 }
  0x3c   :  { %p927_p13 = scmp.ne.s32.totalorder %s74_s20, %s926_s26  ;;  %p931_p0 = scmp.lt.s32.totalorder %s74_s20, %s74_s20 }
  0x3d   :  { %p932_p1 = scmp.lt.s32.totalorder %s930_s3, %s926_s26 }
  0x3f   :  { %p933_p2 = por %p932_p1, %p931_p0 }
  0x41   :  { %p934_p3 = pnand %p933_p2, %p927_p13 }
  0x43   :  { %937 = shalt.err (!%p934_p3)
}
  0x44   :  { %76 = dma.hbm_to_vmem [thread:$0]  %s1207_s10, 16, %s74_s20, [#allocation8]  }
  0x45   :  { %938 = dma.done.wait [#allocation3], 128  }
  0x46   :  { %939 = vsyncadd [#allocation3], 4294967168 }
  0x47   :  { %940 = dma.done.wait [#allocation5], 512  }
  0x48   :  { %941 = vsyncadd [#allocation5], 4294966784 }
  0x49   :  { %942 = dma.done.wait [#allocation8], 16  }
  0x4a   :  { %943 = vsyncadd [#allocation8], 4294967280  ;;  %v952_v0 = vmov 0.0|0.0   ;;  %vm953_vm0 = vmmov 0   ;;  %v954_v1 = vmov 0.0   ;;  %vm104_vm1 = vcmask 1043456  }
  0x4b   :  { %783 = vmatprep.subr.bf16.mxu1 %v952_v0  ;;  %760 = vmatprep.mubr.msk.f32.mxu1 %vm953_vm0, %v954_v1  ;;  %v91_v2 = vld [vmem:[#allocation4] sm:$0xff]  ;;  %v92_v3 = vld [vmem:[#allocation4 + $0x8] sm:$0xf]  ;;  %vm955_vm2 = vmmov 1   ;;  %v90_v5 = vld [vmem:[#allocation2] sm:$0xff]  ;;  %vm100_vm4 = vcmask 97280  }
  0x4c   :  { %771 = vmatprep.subr.bf16.mxu0 %v954_v1  ;;  %779 = vmatprep.mubr.msk.bf16.mxu0 %vm953_vm0, %v954_v1  ;;  %vm785_vm3 = vmpackc.low %vm104_vm1, %vm955_vm2  ;;  %v784_v4 = vpack.c.bf16 %v92_v3, %v91_v2  ;;  %v800_v6 = vld [vmem:[#allocation6] sm:$0xff]   ;;  %v801_v7 = vld [vmem:[#allocation6 + $0x8] sm:$0xff]   ;;  %vm203_vm5 = vcmask 261120   ;;  %v956_v15 = vmov 0   ;;  %vm288_vm6 = vcmask 523264  }
  0x4d   :  { %v802_v8 = vld [vmem:[%s1202_s5] sm:$0xff]   ;;  %v803_v9 = vld [vmem:[%s1202_s5 + $0x8] sm:$0xff]   ;;  %v804_v17 = vld [vmem:[%s1202_s5 + $0x10] sm:$0xff]   ;;  %v352_v3 = vlaneseq  ;;  %vm668_vm7 = vcmask 76800  }
  0x4e   :  { %786 = vmatpush3.bf16.msk.msra.mxu1 %vm785_vm3, %v784_v4  ;;  %772 = vmatpush3.bf16.msra.mxu0 %v802_v8  ;;  %v677_v10 = vld [vmem:[%s1199_s2] ss:$0 sm:$0xff]  ;;  %v805_v18 = vld [vmem:[%s1202_s5 + $0x18] sm:$0xff]   ;;  %v808_v20 = vld [vmem:[%s1204_s7 + $0x4] ss:$8 sps:$4 sm:$0xff]  }
  0x4f   :  { %763 = vmatprep.subr.bf16.mxu1 %v954_v1  ;;  %773 = vmatprep.subr.bf16.mxu0 %v954_v1  ;;  %v806_v19 = vld [vmem:[%s1204_s7] ss:$8 sps:$4 sm:$0xff]   ;;  %v811_v21 = vld [vmem:[%s1204_s7 + $0x14] ss:$8 sps:$4 sm:$0xff]   ;;  %v809_v22 = vld [vmem:[%s1204_s7 + $0x10] ss:$8 sps:$4 sm:$0xff]  }
  0x50   :  { %v814_v23 = vld [vmem:[%s1204_s7 + $0x24] ss:$8 sps:$4 sm:$0xff]   ;;  %v812_v24 = vld [vmem:[%s1204_s7 + $0x20] ss:$8 sps:$4 sm:$0xff]   ;;  %v817_v25 = vld [vmem:[%s1204_s7 + $0x34] ss:$8 sps:$4 sm:$0xff]  }
  0x51   :  { %761 = vmatmul.mubr.msk.f32.vlgmr.msra.gmra.mrb[0].mxu1 %vm100_vm4, %v90_v5  ;;  %v815_v26 = vld [vmem:[%s1204_s7 + $0x30] ss:$8 sps:$4 sm:$0xff]   ;;  %v820_v27 = vld [vmem:[%s1204_s7 + $0x44] ss:$8 sps:$4 sm:$0xff]   ;;  %v818_v28 = vld [vmem:[%s1204_s7 + $0x40] ss:$8 sps:$4 sm:$0xff]  }
  0x52   :  { %767 = vmatprep.mubr.msk.bf16.mxu1 %vm953_vm0, %v954_v1  ;;  %764 = vmatpush3.bf16.msra.mxu1 %v800_v6  ;;  %v823_v29 = vld [vmem:[%s1204_s7 + $0x54] ss:$8 sps:$4 sm:$0xff]   ;;  %v821_v30 = vld [vmem:[%s1204_s7 + $0x50] ss:$8 sps:$4 sm:$0xff]   ;;  %v826_v31 = vld [vmem:[%s1204_s7 + $0x64] ss:$8 sps:$4 sm:$0xff]  }
  0x53   :  { %765 = vmatprep.subr.bf16.mxu1 %v954_v1  ;;  %774 = vmatpush3.bf16.msra.mxu0 %v803_v9  ;;  %v824_v32 = vld [vmem:[%s1204_s7 + $0x60] ss:$8 sps:$4 sm:$0xff]   ;;  %v829_v41 = vld [vmem:[%s1204_s7 + $0x74] ss:$8 sps:$4 sm:$0xff]   ;;  %v827_v42 = vld [vmem:[%s1204_s7 + $0x70] ss:$8 sps:$4 sm:$0xff]  }
  0x54   :  { %775 = vmatprep.subr.bf16.mxu0 %v954_v1  ;;  %v680_v33 = vld [vmem:[%s1201_s4] ss:$0 sm:$0xff]  ;;  %v832_v45 = vld [vmem:[%s1206_s9 + $0x48] sm:$0xff]   ;;  %v834_v47 = vld [vmem:[%s1206_s9 + $0x50] sm:$0xff]   ;;  %v353_v4 = vshrl.u32 %v352_v3, 7 }
  0x55   :  { %v830_v43 = vld [vmem:[%s1206_s9 + $0x40] sm:$0xff]   ;;  %v833_v46 = vld [vmem:[%s1206_s9 + $0x8] sm:$0xff]   ;;  %v835_v48 = vld [vmem:[%s1206_s9 + $0x10] sm:$0xff]  }
  0x56   :  { %766 = vmatpush3.bf16.msra.mxu1 %v801_v7  ;;  %v831_v44 = vld [vmem:[%s1206_s9] sm:$0xff]   ;;  %v836_v49 = vld [vmem:[%s1206_s9 + $0x58] sm:$0xff]   ;;  %v840_v53 = vld [vmem:[%s1206_s9 + $0x68] sm:$0xff]   ;;  %v354_v5 = vsub.s32 0, %v353_v4  ;;  %v358_v7 = vsub.s32 1, %v353_v4 }
  0x57   :  { %776 = vmatpush3.bf16.msra.mxu0 %v804_v17  ;;  %442 = vmatprep.subr.bf16.mxu1 %v808_v20  ;;  %v837_v50 = vld [vmem:[%s1206_s9 + $0x18] sm:$0xff]   ;;  %v838_v51 = vld [vmem:[%s1206_s9 + $0x60] sm:$0xff]   ;;  %v841_v54 = vld [vmem:[%s1206_s9 + $0x28] sm:$0xff]  }
  0x58   :  { %777 = vmatprep.subr.bf16.mxu0 %v954_v1  ;;  %v839_v52 = vld [vmem:[%s1206_s9 + $0x20] sm:$0xff]   ;;  %v842_v63 = vld [vmem:[%s1206_s9 + $0x70] sm:$0xff]   ;;  %v844_v1 = vld [vmem:[%s1206_s9 + $0x78] sm:$0xff]  }
  0x59   :  { %v684_v55 = vld [vmem:[%s1203_s6] ss:$0 sm:$0xff]  ;;  %v843_v0 = vld [vmem:[%s1206_s9 + $0x30] sm:$0xff]   ;;  %v845_v2 = vld [vmem:[%s1206_s9 + $0x38] sm:$0xff]  }
  0x5a   :  { %v350_v6 = vld [vmem:[%s1205_s8] sm:$0x3] }
  0x5b   :  { %778 = vmatpush3.bf16.msra.mxu0 %v805_v18  ;;  %v355_v8 = vrot.slane %v350_v6, %v354_v5  ;;  %v359_v9 = vrot.slane %v350_v6, %v358_v7 }
  0x5c   :  { %734 = vmatprep.subr.bf16.mxu0 %v830_v43 }
 0x124   :  { %v174_v11 = vpop.f32.mrb[0].mxu1 }
 0x125   :  { %v175_v12 = vadd.f32 %v677_v10, %v174_v11  ;;  %v762_v13 = vpop.f32.mrb[1].mxu1 }
 0x127   :  { %v178_v14 = vpack.c.bf16 %v175_v12, %v175_v12 }
 0x129   :  { %v179_v16 = vmax.bf16 %v956_v15, %v178_v14 }
 0x12b   :  { %768 = vmatmul.mubr.msk.bf16.vlgmr.msra.gmra.mrb[4].mxu1 %vm203_vm5, %v179_v16 }
 0x12c   :  { %474 = vmatprep.mubr.bf16.mxu1 %v956_v15  ;;  %443 = vmatpush1.bf16.msra.mxu1 %v806_v19 }
 0x12d   :  { %444 = vmatprep.subr.bf16.mxu1 %v811_v21 }
 0x130   :  { %445 = vmatpush1.bf16.msra.mxu1 %v809_v22  ;;  %v706_v22 = vld [vmem:[#allocation7] ss:$0 sm:$0xff] }
 0x131   :  { %446 = vmatprep.subr.bf16.mxu1 %v814_v23 }
 0x134   :  { %447 = vmatpush1.bf16.msra.mxu1 %v812_v24 }
 0x135   :  { %448 = vmatprep.subr.bf16.mxu1 %v817_v25 }
 0x138   :  { %449 = vmatpush1.bf16.msra.mxu1 %v815_v26 }
 0x139   :  { %450 = vmatprep.subr.bf16.mxu1 %v820_v27 }
 0x13c   :  { %451 = vmatpush1.bf16.msra.mxu1 %v818_v28 }
 0x13d   :  { %452 = vmatprep.subr.bf16.mxu1 %v823_v29 }
 0x140   :  { %453 = vmatpush1.bf16.msra.mxu1 %v821_v30 }
 0x141   :  { %454 = vmatprep.subr.bf16.mxu1 %v826_v31 }
 0x144   :  { %455 = vmatpush1.bf16.msra.mxu1 %v824_v32 }
 0x145   :  { %456 = vmatprep.subr.bf16.mxu1 %v829_v41 }
 0x148   :  { %457 = vmatpush1.bf16.msra.mxu1 %v827_v42 }
 0x1fe   :  { %v241_v34 = vpop.f32.mrb[4].mxu1 }
 0x1ff   :  { %v242_v35 = vadd.f32 %v680_v33, %v241_v34  ;;  %v769_v36 = vpop.f32.mrb[5].mxu1 }
 0x200   :  { %v244_v37 = vpop.f32.mrb[6].mxu1 }
 0x201   :  { %v247_v38 = vpack.c.bf16 %v242_v35, %v242_v35  ;;  %v770_v39 = vpop.f32.mrb[7].mxu1 }
 0x203   :  { %v248_v40 = vmax.bf16 %v956_v15, %v247_v38 }
 0x205   :  { %780 = vmatmul.mubr.msk.bf16.vlgmr.msra.gmra.mrb[0].mxu0 %vm288_vm6, %v248_v40 }
 0x206   :  { %735 = vmatpush3.bf16.msra.mxu0 %v831_v44 }
 0x207   :  { %736 = vmatprep.subr.bf16.mxu0 %v832_v45 }
 0x20a   :  { %737 = vmatpush3.bf16.msra.mxu0 %v833_v46 }
 0x20b   :  { %738 = vmatprep.subr.bf16.mxu0 %v834_v47 }
 0x20e   :  { %739 = vmatpush3.bf16.msra.mxu0 %v835_v48 }
 0x20f   :  { %740 = vmatprep.subr.bf16.mxu0 %v836_v49 }
 0x212   :  { %741 = vmatpush3.bf16.msra.mxu0 %v837_v50 }
 0x213   :  { %742 = vmatprep.subr.bf16.mxu0 %v838_v51 }
 0x216   :  { %743 = vmatpush3.bf16.msra.mxu0 %v839_v52 }
 0x217   :  { %744 = vmatprep.subr.bf16.mxu0 %v840_v53 }
 0x21a   :  { %745 = vmatpush3.bf16.msra.mxu0 %v841_v54 }
 0x21b   :  { %746 = vmatprep.subr.bf16.mxu0 %v842_v63 }
 0x21e   :  { %747 = vmatpush3.bf16.msra.mxu0 %v843_v0 }
 0x21f   :  { %748 = vmatprep.subr.bf16.mxu0 %v844_v1 }
 0x222   :  { %749 = vmatpush3.bf16.msra.mxu0 %v845_v2 }
 0x2d8   :  { %v326_v56 = vpop.f32.mrb[0].mxu0 }
 0x2d9   :  { %v327_v57 = vadd.f32 %v684_v55, %v326_v56  ;;  %v781_v58 = vpop.f32.mrb[1].mxu0 }
 0x2da   :  { %v329_v59 = vpop.f32.mrb[2].mxu0 }
 0x2db   :  { %v332_v60 = vpack.c.bf16 %v327_v57, %v327_v57  ;;  %v782_v61 = vpop.f32.mrb[3].mxu0 }
 0x2dd   :  { %v333_v62 = vmax.bf16 %v956_v15, %v332_v60 }
 0x2df   :  { %475 = vmatmul.mubr.bf16.vlgmr.msra.gmra.mrb[8].mxu1 %v333_v62 }
 0x3b2   :  { %v476_v10 = vpop.f32.mrb[8].mxu1 }
 0x3b3   :  { %v477_v11 = vadd.f32 %v476_v10, %v355_v8  ;;  %v478_v12 = vpop.f32.mrb[9].mxu1 }
 0x3b4   :  { %v479_v13 = vadd.f32 %v478_v12, %v359_v9  ;;  %v480_v14 = vpop.f32.mrb[10].mxu1 }
 0x3b5   :  { %v483_v16 = vpack.c.bf16 %v477_v11, %v477_v11  ;;  %v481_v17 = vpop.f32.mrb[11].mxu1 }
 0x3b6   :  { %v484_v18 = vpack.c.bf16 %v479_v13, %v479_v13 }
 0x3b7   :  { %v485_v20 = vmax.bf16 %v956_v15, %v483_v16 }
 0x3b8   :  { %v486_v19 = vmax.bf16 %v956_v15, %v484_v18 }
 0x3ba   :  { %654 = vmatprep.mubr.bf16.mxu0 %v486_v19 }
 0x3bb   :  { %655 = vmatmul.mubr.bf16.vlgmr.msra.gmra.mrb[4].mxu0 %v485_v20 }
 0x48e   :  { %v750_v21 = vpop.f32.mrb[4].mxu0 }
 0x48f   :  { %v751_v23 = vpop.f32.mrb[5].mxu0 }
 0x490   :  { %v752_v24 = vadd.f32 %v751_v23, %v750_v21  ;;  %v753_v25 = vpop.f32.mrb[6].mxu0 }
 0x491   :  { %v754_v26 = vpop.f32.mrb[7].mxu0 }
 0x492   :  { %v657_v27 = vadd.f32 %v752_v24, %v706_v22 }
 0x494   :  { %v662_v28 = vsub.f32 0.0, %v657_v27 }
 0x496   :  { %v663_v29 = vmul.f32 1.442695, %v662_v28 }
 0x498   :  { %846 = vpow2.f32 %v663_v29 }
 0x4a2   :  { %v847_v30 = vpop.eup %846 }
 0x4a3   :  { %v665_v31 = vadd.f32 1.0, %v847_v30 }
 0x4a5   :  { %848 = vrcp.f32 %v665_v31 }
 0x4af   :  { %v849_v32 = vpop.eup %848 }
 0x4b0   :  { %v667_v33 = vpack.c.bf16 %v849_v32, %v849_v32 }
 0x4b2   :  { %669 = vst.msk [vmem:[%s1208_s11] sm:$0xf] %vm668_vm7, %v667_v33 }
 0x4b3   :  { %674 = vsyncpa [#allocation3], 1 }
 0x4b4   :  { %675 = vsyncpa [#allocation5], 1 }
 0x4b5   :  { %676 = vsyncpa [#allocation8], 1 }

</bundles_post_ra>
